<compile_context>
chip_gen: v7x
topology: tpu7x:2x2x1
jax: 0.10.0
libtpu: 0.0.40
codegen_flags: <defaults>
</compile_context>

<pallas_src>
import jax
import jax.numpy as jnp
from jax.experimental import pallas as pl
from jax.experimental.pallas import tpu as pltpu


# ---------------------------------------------------------------------------
# Primary kernel: HBM -> HBM DMA concat (no TensorCore work, no VMEM staging)
# ---------------------------------------------------------------------------
def _concat_dma_kernel(screen_ref, aux_ref, out_ref, sem):
    flat = screen_ref.shape[1]
    d = aux_ref.shape[1]
    cp_screen = pltpu.make_async_copy(
        screen_ref, out_ref.at[:, pl.ds(0, flat)], sem.at[0])
    cp_aux = pltpu.make_async_copy(
        aux_ref, out_ref.at[:, pl.ds(flat, d)], sem.at[1])
    cp_screen.start()
    cp_aux.start()
    cp_screen.wait()
    cp_aux.wait()


def _concat_via_dma(screen_flat: jax.Array, aux_vec: jax.Array) -> jax.Array:
    B, flat = screen_flat.shape
    D = aux_vec.shape[1]
    dtype = screen_flat.dtype
    itemsize = jnp.dtype(dtype).itemsize
    return pl.pallas_call(
        _concat_dma_kernel,
        out_shape=jax.ShapeDtypeStruct((B, flat + D), dtype),
        in_specs=[
            pl.BlockSpec(memory_space=pl.ANY),
            pl.BlockSpec(memory_space=pl.ANY),
        ],
        out_specs=pl.BlockSpec(memory_space=pl.ANY),
        scratch_shapes=[pltpu.SemaphoreType.DMA((2,))],
        cost_estimate=pl.CostEstimate(
            flops=0, transcendentals=0,
            bytes_accessed=2 * B * (flat + D) * itemsize),
    )(screen_flat, aux_vec)


# ---------------------------------------------------------------------------
# Fallback kernels (lane-dense tiled copy / whole-row copy)
# ---------------------------------------------------------------------------
def _concat_tiled_kernel(screen_ref, aux_ref, out_ref):
    # Grid axis 0 = column tiles (screen tiles first, then one aux tile),
    # grid axis 1 = batch tiles.
    j = pl.program_id(0)
    n_screen = pl.num_programs(0) - 1
    d = aux_ref.shape[1]

    @pl.when(j < n_screen)
    def _():
        out_ref[...] = screen_ref[...]

    @pl.when(j == n_screen)
    def _():
        # Final (partial) output column block: only the first d lanes map to
        # real output columns [flat, flat + d); writeback is masked.
        out_ref[:, 0:d] = aux_ref[...]


def _concat_rows_kernel(screen_ref, aux_ref, out_ref):
    flat = screen_ref.shape[1]
    d = aux_ref.shape[1]
    out_ref[:, 0:flat] = screen_ref[...]
    out_ref[:, flat:flat + d] = aux_ref[...]


def _pick_batch_tile(b: int, itemsize: int) -> int:
    # Dtype-aware: prefer the native sublane packing multiple (8 for 4-byte,
    # 16 for 2-byte, 32 for 1-byte) so vregs / stores are fully occupied.
    min_sublane = {4: 8, 2: 16, 1: 32}.get(itemsize, 8)
    for tb in (256, 128, 64, 32, 16, 8):
        if tb >= min_sublane and b % tb == 0:
            return tb
    return b


def _pick_col_tile(flat: int, cap: int = 2048) -> int:
    # Largest multiple of 128 that divides `flat`, capped so each grid step
    # moves >= ~1 MB (amortizes the ~0.35 us per-step pipeline overhead).
    best = 128
    t = 128
    while t <= min(flat, cap):
        if flat % t == 0:
            best = t
        t += 128
    return best


def _concat_tiled(screen_flat: jax.Array, aux_vec: jax.Array) -> jax.Array:
    B, flat = screen_flat.shape
    D = aux_vec.shape[1]
    dtype = screen_flat.dtype
    itemsize = jnp.dtype(dtype).itemsize
    TB = _pick_batch_tile(B, itemsize)
    cost = pl.CostEstimate(flops=0, transcendentals=0,
                           bytes_accessed=2 * B * (flat + D) * itemsize)

    if flat % 128 == 0 and D <= 2048:
        # Lane-dense path: the concat seam sits on a 128-lane boundary.
        TF = _pick_col_tile(flat)
        n_screen = flat // TF
        # Double-buffered footprint: screen block + aux block + out block.
        footprint = 2 * (2 * TB * TF + TB * D) * itemsize
        vmem_limit = None if footprint <= 12 * 1024 * 1024 \
            else footprint + (8 << 20)  # never below the real footprint
        return pl.pallas_call(
            _concat_tiled_kernel,
            out_shape=jax.ShapeDtypeStruct((B, flat + D), dtype),
            # Column axis leading so the axis with extent > 1 is always
            # available for megacore sharding even when B // TB == 1.
            grid=(n_screen + 1, B // TB),
            in_specs=[
                pl.BlockSpec((TB, TF),
                             lambda j, i: (i, jnp.minimum(j, n_screen - 1))),
                pl.BlockSpec((TB, D), lambda j, i: (i, 0)),
            ],
            out_specs=pl.BlockSpec((TB, TF), lambda j, i: (i, j)),
            compiler_params=pltpu.CompilerParams(
                dimension_semantics=("parallel", "parallel"),
                vmem_limit_bytes=vmem_limit),
            cost_estimate=cost,
        )(screen_flat, aux_vec)

    # Irregular widths: whole-row copy per batch tile, TB shrunk so the
    # double-buffered footprint stays well inside even v7x's 64 MiB VMEM.
    row_bytes = (flat + D) * itemsize
    while TB > 1 and 2 * 2 * TB * row_bytes > 24 * 1024 * 1024:
        TB = max(1, TB // 2)
    footprint = 2 * 2 * TB * row_bytes
    vmem_limit = None if footprint <= 12 * 1024 * 1024 \
        else footprint + (8 << 20)
    return pl.pallas_call(
        _concat_rows_kernel,
        out_shape=jax.ShapeDtypeStruct((B, flat + D), dtype),
        grid=(pl.cdiv(B, TB),),
        in_specs=[
            pl.BlockSpec((TB, flat), lambda i: (i, 0)),
            pl.BlockSpec((TB, D), lambda i: (i, 0)),
        ],
        out_specs=pl.BlockSpec((TB, flat + D), lambda i: (i, 0)),
        compiler_params=pltpu.CompilerParams(
            dimension_semantics=("parallel",),
            vmem_limit_bytes=vmem_limit),
        cost_estimate=cost,
    )(screen_flat, aux_vec)


# ---------------------------------------------------------------------------
# Wrapper: BaseNet observation flatten + concat
# ---------------------------------------------------------------------------
def basenet_observation_cat(screen_nchw: jax.Array,
                            aux_vec: jax.Array) -> jax.Array:
    """Pallas equivalent of BaseNet's observation flatten+concat.

    screen_nchw: [B, C, H, W]   (NCHW, matching the PyTorch convention)
    aux_vec:     [B, D]
    returns:     [B, C*H*W + D] (== BaseNet.input_cat_length per batch row)
    """
    B, C, H, W = screen_nchw.shape
    flat = C * H * W

    # torch.cat-style dtype promotion; no-op (no copy) when dtypes match.
    out_dtype = jnp.promote_types(screen_nchw.dtype, aux_vec.dtype)
    if screen_nchw.dtype != out_dtype:
        screen_nchw = screen_nchw.astype(out_dtype)
    if aux_vec.dtype != out_dtype:
        aux_vec = aux_vec.astype(out_dtype)

    # Contiguous reshape (layout-preserving, no compute) in plain JAX glue.
    screen_flat = screen_nchw.reshape(B, flat)

    try:
        out = _concat_via_dma(screen_flat, aux_vec)
        return jax.block_until_ready(out)
    except Exception:
        # Safety net if HBM->HBM DMA lowering is unavailable on this
        # toolchain: lane-dense tiled copy through VMEM.
        return _concat_tiled(screen_flat, aux_vec)


# ---------------------------------------------------------------------------
# Self-test
# ---------------------------------------------------------------------------
if __name__ == "__main__":
    # Config implied by BaseNet.__init__:
    #   observation_dim = [(num_channels, screen_length, screen_width), aux_dim]
    #   action_dim      = num_actions  (declared by the module, no compute uses it)
    B, C, H, W = 2, 4, 16, 16
    AUX_D = 8
    NUM_ACTIONS = 6  # noqa: F841

    key = jax.random.PRNGKey(0)
    k1, k2 = jax.random.split(key)
    screen = jax.random.normal(k1, (B, C, H, W), dtype=jnp.float32)
    aux = jax.random.normal(k2, (B, AUX_D), dtype=jnp.float32)

    out = basenet_observation_cat(screen, aux)
    out = jax.block_until_ready(out)

    # Sanity check against pure-JAX reference of the flatten+concat semantics.
    ref = jnp.concatenate([screen.reshape(B, C * H * W), aux], axis=1)
    assert out.shape == (B, C * H * W + AUX_D), out.shape
    assert out.dtype == ref.dtype, (out.dtype, ref.dtype)
    assert jnp.allclose(out, ref), "mismatch vs reference"

    print("KERNEL_OK")
</pallas_src>

<mosaic_0001>
module attributes {stable_mosaic.version = 11 : i64} {
  func.func @_concat_dma_kernel(%arg0: memref<2x1024xf32, #tpu.memory_space<any>>, %arg1: memref<2x8xf32, #tpu.memory_space<any>>, %arg2: memref<2x1032xf32, #tpu.memory_space<any>>, %arg3: memref<2x!tpu.dma_semaphore, #tpu.memory_space<semaphore_mem>>) attributes {dimension_semantics = [], scalar_prefetch = 0 : i64, scratch_operands = 1 : i64, tpu.core_type = #tpu.core_type<tc>} {
    %c0_i32 = arith.constant 0 : i32
    %c0_i32_0 = arith.constant 0 : i32
    %c0_i32_1 = arith.constant 0 : i32
    %0 = tpu.memref_slice %arg2[%c0_i32_0, %c0_i32_1] : memref<2x1032xf32, #tpu.memory_space<any>> -> memref<2x1024xf32, #tpu.memory_space<any>>
    %1 = tpu.memref_slice %arg3[%c0_i32] : memref<2x!tpu.dma_semaphore, #tpu.memory_space<semaphore_mem>> -> memref<1x!tpu.dma_semaphore, #tpu.memory_space<semaphore_mem>>
    %2 = tpu.memref_squeeze %1 : memref<1x!tpu.dma_semaphore, #tpu.memory_space<semaphore_mem>> -> memref<!tpu.dma_semaphore, #tpu.memory_space<semaphore_mem>>
    tpu.enqueue_dma source(%arg0 : memref<2x1024xf32, #tpu.memory_space<any>>) target(%0 : memref<2x1024xf32, #tpu.memory_space<any>>) target_semaphore(%2 : memref<!tpu.dma_semaphore, #tpu.memory_space<semaphore_mem>>)
    %c1_i32 = arith.constant 1 : i32
    %c0_i32_2 = arith.constant 0 : i32
    %c1024_i32 = arith.constant 1024 : i32
    %3 = tpu.memref_slice %arg2[%c0_i32_2, %c1024_i32] : memref<2x1032xf32, #tpu.memory_space<any>> -> memref<2x8xf32, #tpu.memory_space<any>>
    %4 = tpu.memref_slice %arg3[%c1_i32] : memref<2x!tpu.dma_semaphore, #tpu.memory_space<semaphore_mem>> -> memref<1x!tpu.dma_semaphore, #tpu.memory_space<semaphore_mem>>
    %5 = tpu.memref_squeeze %4 : memref<1x!tpu.dma_semaphore, #tpu.memory_space<semaphore_mem>> -> memref<!tpu.dma_semaphore, #tpu.memory_space<semaphore_mem>>
    tpu.enqueue_dma source(%arg1 : memref<2x8xf32, #tpu.memory_space<any>>) target(%3 : memref<2x8xf32, #tpu.memory_space<any>>) target_semaphore(%5 : memref<!tpu.dma_semaphore, #tpu.memory_space<semaphore_mem>>)
    %c0_i32_3 = arith.constant 0 : i32
    %c0_i32_4 = arith.constant 0 : i32
    %c0_i32_5 = arith.constant 0 : i32
    %6 = tpu.memref_slice %arg2[%c0_i32_4, %c0_i32_5] : memref<2x1032xf32, #tpu.memory_space<any>> -> memref<2x1024xf32, #tpu.memory_space<any>>
    %7 = tpu.memref_slice %arg3[%c0_i32_3] : memref<2x!tpu.dma_semaphore, #tpu.memory_space<semaphore_mem>> -> memref<1x!tpu.dma_semaphore, #tpu.memory_space<semaphore_mem>>
    %8 = tpu.memref_squeeze %7 : memref<1x!tpu.dma_semaphore, #tpu.memory_space<semaphore_mem>> -> memref<!tpu.dma_semaphore, #tpu.memory_space<semaphore_mem>>
    tpu.wait_dma2 semaphore(%8 : memref<!tpu.dma_semaphore, #tpu.memory_space<semaphore_mem>>) src(%arg0 : memref<2x1024xf32, #tpu.memory_space<any>>) dst(%6 : memref<2x1024xf32, #tpu.memory_space<any>>)
    %c1_i32_6 = arith.constant 1 : i32
    %c0_i32_7 = arith.constant 0 : i32
    %c1024_i32_8 = arith.constant 1024 : i32
    %9 = tpu.memref_slice %arg2[%c0_i32_7, %c1024_i32_8] : memref<2x1032xf32, #tpu.memory_space<any>> -> memref<2x8xf32, #tpu.memory_space<any>>
    %10 = tpu.memref_slice %arg3[%c1_i32_6] : memref<2x!tpu.dma_semaphore, #tpu.memory_space<semaphore_mem>> -> memref<1x!tpu.dma_semaphore, #tpu.memory_space<semaphore_mem>>
    %11 = tpu.memref_squeeze %10 : memref<1x!tpu.dma_semaphore, #tpu.memory_space<semaphore_mem>> -> memref<!tpu.dma_semaphore, #tpu.memory_space<semaphore_mem>>
    tpu.wait_dma2 semaphore(%11 : memref<!tpu.dma_semaphore, #tpu.memory_space<semaphore_mem>>) src(%arg1 : memref<2x8xf32, #tpu.memory_space<any>>) dst(%9 : memref<2x8xf32, #tpu.memory_space<any>>)
    return
  }
}

module attributes {stable_mosaic.version = 11 : i64} {
  func.func @_concat_tiled_kernel(%arg0: i32, %arg1: i32, %arg2: memref<2x1024xf32, #tpu.memory_space<vmem>>, %arg3: memref<2x8xf32, #tpu.memory_space<vmem>>, %arg4: memref<2x1024xf32, #tpu.memory_space<vmem>>) attributes {dimension_semantics = [#tpu.dimension_semantics<parallel>, #tpu.dimension_semantics<parallel>], iteration_bounds = array<i64: 2, 1>, scalar_prefetch = 0 : i64, scratch_operands = 0 : i64, tpu.core_type = #tpu.core_type<tc>, window_params = [{transform_indices = @transform_0, window_bounds = array<i64: 2, 1024>}, {transform_indices = @transform_1, window_bounds = array<i64: 2, 8>}, {transform_indices = @transform_2, window_bounds = array<i64: 2, 1024>}]} {
    %c1_i32 = arith.constant 1 : i32
    %0 = arith.cmpi slt, %arg0, %c1_i32 : i32
    %1 = arith.extui %0 : i1 to i32
    %c0_i32 = arith.constant 0 : i32
    %2 = arith.cmpi ne, %1, %c0_i32 : i32
    scf.if %2 {
      %c0 = arith.constant 0 : index
      %c0_2 = arith.constant 0 : index
      %6 = vector.load %arg2[%c0, %c0_2] : memref<2x1024xf32, #tpu.memory_space<vmem>>, vector<2x1024xf32>
      %c0_3 = arith.constant 0 : index
      %c0_4 = arith.constant 0 : index
      %7 = vector.load %arg4[%c0_3, %c0_4] : memref<2x1024xf32, #tpu.memory_space<vmem>>, vector<2x1024xf32>
      tpu.vector_store %arg4[%c0_3, %c0_4], %6 {strides = array<i32>} : memref<2x1024xf32, #tpu.memory_space<vmem>>, vector<2x1024xf32>,
    } else {
    }
    %c1_i32_0 = arith.constant 1 : i32
    %3 = arith.cmpi eq, %arg0, %c1_i32_0 : i32
    %4 = arith.extui %3 : i1 to i32
    %c0_i32_1 = arith.constant 0 : i32
    %5 = arith.cmpi ne, %4, %c0_i32_1 : i32
    scf.if %5 {
      %c0 = arith.constant 0 : index
      %c0_2 = arith.constant 0 : index
      %6 = vector.load %arg3[%c0, %c0_2] : memref<2x8xf32, #tpu.memory_space<vmem>>, vector<2x8xf32>
      %c0_3 = arith.constant 0 : index
      %c0_4 = arith.constant 0 : index
      %7 = vector.load %arg4[%c0_3, %c0_4] : memref<2x1024xf32, #tpu.memory_space<vmem>>, vector<2x8xf32>
      tpu.vector_store %arg4[%c0_3, %c0_4], %6 {strides = array<i32>} : memref<2x1024xf32, #tpu.memory_space<vmem>>, vector<2x8xf32>,
    } else {
    }
    return
  }
  func.func @transform_0(%arg0: i32, %arg1: i32) -> (i32, i32) {
    %c0_i32 = arith.constant 0 : i32
    %0 = arith.minsi %arg0, %c0_i32 : i32
    %c0_i32_0 = arith.constant 0 : i32
    return %arg1, %0 : i32, i32
  }
  func.func @transform_1(%arg0: i32, %arg1: i32) -> (i32, i32) {
    %c0_i32 = arith.constant 0 : i32
    %c0_i32_0 = arith.constant 0 : i32
    return %arg1, %c0_i32 : i32, i32
  }
  func.func @transform_2(%arg0: i32, %arg1: i32) -> (i32, i32) {
    %c0_i32 = arith.constant 0 : i32
    return %arg1, %arg0 : i32, i32
  }
}

</mosaic_0001>

<bundles_post_ra>
// kernel: tpu_custom_call.1
= control target key start
LH: loop header
LB: loop body
LE: loop exit
PB: predicated region body
PF: predicated region fallthrough
CT: control target
= control target key end

     0   :  { %7 = vsyncpa [#allocation3], 0  ;;  %s785_s0 = inlined_call_operand.hbm [shape: f32[2,1024], index: 0, kind: input, shape index: {}]   ;;  %s786_s1 = inlined_call_operand.vmem [shape: f32[2,8], index: 1, kind: input, shape index: {}]   ;;  %s787_s2 = inlined_call_operand.hbm [shape: f32[2,1032], index: 2, kind: output, shape index: {}]  }
   0x1   :  { %9 = vsyncpa [#allocation3 + $0x1], 0 }
   0x2   :  { %10 = vsyncpa [#allocation4], 0 }
   0x3   :  { %12 = vsyncpa [#allocation4 + $0x1], 0  ;;  %s607_s9 = smov 0   ;;  %s609_s10 = smov 0  }
   0x4   :  { %s611_s11 = smov 0   ;;  %s613_s12 = smov 0  }
   0x5   :  { %s615_s13 = smov 0   ;;  %s617_s14 = smov 0  }
   0x6   :  { %s619_s15 = smov 0   ;;  %s621_s16 = smov 0  }
   0x7 LB: > { %s346_s17 = sadd.s32 4294967295, %s588_s16   ;;  %s347_s18 = sadd.s32 4294967294, %s588_s16   ;;  %s588_s16 = sphi %s621_s16, %s18_s16   ;;  %s584_s15 = sphi %s619_s15, %s807_s15   ;;  %s580_s14 = sphi %s617_s14, %s806_s14   ;;  %s576_s13 = sphi %s615_s13, %s775_s13   ;;  %s572_s12 = sphi %s613_s12, %s805_s12   ;;  %s568_s11 = sphi %s611_s11, %s804_s11   ;;  %s564_s10 = sphi %s609_s10, %s803_s10   ;;  %s560_s9 = sphi %s607_s9, %s802_s9  }
   0x8   : > { %s30_s19 = sadd.s32 1, %s584_s15  ;;  %p557_p1 = scmp.ne.s32.totalorder %s576_s13, 0 }
   0x9   : > { %p32_p0 = scmp.ge.s32.totalorder %s30_s19, 2  ;;  %p51_p2 = scmp.eq.s32.totalorder %s588_s16, 0 }
   0xa   : > { %p56_p3 = scmp.ne.s32.totalorder %s576_s13, %s572_s12  ;;  %p57_p5 = scmp.eq.s32.totalorder %s346_s17, 0 }
   0xb   : > { %s809_s19 = smov (%p32_p0, %s30_s19), 0  ;;  %p653_p4 = por %p557_p1, %p51_p2 }
   0xc   : > { %p657_p6 = por %p57_p5, %p56_p3  ;;  %s93_s22 = ssub.s32 %s584_s15, %s809_s19 }
   0xd   : > { %p95_p7 = scmp.eq.s32.totalorder %s93_s22, 0  ;;  %s97_s23 = sadd.s32 1, %s568_s11 }
   0xe   : > { %s791_s21 = scalar_select %p657_p6, 1, 0 }
   0xf   : > { %s665_s24 = scalar_select %p95_p7, %s568_s11, %s97_s23  }
  0x10   : > { %p107_p8 = scmp.ne.s32.totalorder %s568_s11, %s564_s10  ;;  %p108_p9 = scmp.eq.s32.totalorder %s346_s17, 1 }
  0x11   : > { %p113_p10 = scmp.ne.s32.totalorder %s564_s10, %s560_s9  ;;  %p114_p11 = scmp.eq.s32.totalorder %s347_s18, 1 }
  0x12   : > { %p671_p12 = por %p108_p9, %p107_p8  ;;  %p381_p1 = scmp.lt.s32.totalorder %s588_s16, 2 }
  0x13   : > { %p676_p0 = por %p114_p11, %p113_p10  ;;  %s590_s27 = smov [#allocation2]  }
  0x14   : > { %s792_s25 = scalar_select %p671_p12, 1, 0 }
  0x15   : > { %s793_s26 = scalar_select %p676_p0, 1, 0 }
  0x16   : > { %s157_s28 = sshll.u32 %s590_s27, 4  ;;  %p683_p2 = pnand %p381_p1, %p653_p4  ;;  %s158_s28 = int_to_ptr.vmem [resolvable:$true] %s157_s28 }
  0x17   : > { %s455_s4 = scalar_lea.hbm %s785_s0, 256 }
  0x18   : > { %s794_s29 = scalar_select %p683_p2, 1, 0 }
  0x19   : > { %p456_p7 = scmp.ne.s32.totalorder %s785_s0, %s455_s4  ;;  %p457_p8 = pneg %p683_p2 }
  0x1a   : > { %p462_p4 = scmp.lt.u32.totalorder %s455_s4, %s455_s4  ;;  %p464_p11 = scmp.lt.u32.totalorder %s455_s4, %s785_s0 }
  0x1b   : > { %p458_p9 = pnand %p457_p8, %p456_p7 }
  0x1c   : > { %p465_p1 = por %p464_p11, %p462_p4 }
  0x1d   : > { %p459_p10 = pneg %p458_p9 }
  0x1f   : > { %p466_p13 = pnand %p465_p1, %p459_p10 }
  0x21   : > { %469 = shalt.err (!%p466_p13)
}
  0x22   : > { %s470_s12 = scalar_lea.vmem %s158_s28, 256  ;;  %s477_s17 = scalar_lea.vmem %s158_s28, 512 }
  0x23   : > { %p471_p3 = scmp.ne.s32.totalorder %s158_s28, %s470_s12  ;;  %p478_p12 = scmp.lt.s32.totalorder %s158_s28, %s158_s28 }
  0x24   : > { %p479_p6 = scmp.lt.s32.totalorder %s477_s17, %s470_s12 }
  0x25   : > { %p473_p5 = pnand %p471_p3, %p457_p8 }
  0x26   : > { %p480_p2 = por %p479_p6, %p478_p12 }
  0x27   : > { %p474_p0 = pneg %p473_p5 }
  0x29   : > { %p481_p7 = pnand %p480_p2, %p474_p0 }
  0x2b   : > { %484 = shalt.err (!%p481_p7)
}
  0x2c   : > { %p795_p9 = scmp.ne.s32.totalorder %s794_s29, 0  ;;  %p796_p10 = scmp.lt.s32.totalorder %s588_s16, 3 }
  0x2d   : > { %p797_p13 = scmp.ge.s32.totalorder %s588_s16, 1 }
  0x2e   : > { %376 = dma.hbm_to_vmem [thread:$0]  (!%p795_p9), %s785_s0, 256, %s158_s28, [#allocation3]  }
  0x2f   : > { %p163_p4 = pnand %p797_p13, %p796_p10 }
  0x30   : > { %s168_s22 = sand.u32 (!%p163_p4), 1, %s576_s13   ;;  %p798_p6 = scmp.ne.s32.totalorder (!%p163_p4), %s791_s21, 0 }
  0x31   : > { %166 = sbr.rel (%p163_p4) target bundleno = 111 (0x6f), region = 28  ;;  %s355_s23 = sshll.u32 (!%p163_p4), %s168_s22, 4 }
  0x32   : > { %s169_s27 = scalar_lea.sflag (!%p163_p4), [#allocation3], %s168_s22  ;;  %s172_s30 = scalar_lea.vmem (!%p163_p4), [#allocation2], %s355_s23 }
  0x38   : > { %550 = dma.done.wait (%p798_p6), %s169_s27, 256  }
  0x39   : > { %552 = vsyncadd (%p798_p6), %s169_s27, 4294967040  ;;  %s194_s29 = sand.u32 1, %s564_s10   ;;  %p357_p12 = scmp.ge.s32.totalorder %s580_s14, 1 }
  0x3a   : > { %s356_s3 = sshll.u32 %s194_s29, 4  ;;  %v213_v0 = vld [vmem:[%s172_s30] sm:$0xff] (!%p357_p12)  ;;  %v214_v1 = vld [vmem:[%s172_s30 + $0x8] sm:$0xff] (!%p357_p12) }
  0x3b   : > { %s196_s4 = scalar_lea.vmem [#allocation5], %s356_s3  ;;  %212 = sbr.rel (%p357_p12) target bundleno = 66 (0x42), region = 36 }
  0x3c   : > { %215 = vst [vmem:[%s196_s4] sm:$0xff] (!%p357_p12), %v213_v0  ;;  %216 = vst [vmem:[%s196_s4 + $0x8] sm:$0xff] (!%p357_p12), %v214_v1 }
  0x42 PF: > { %p358_p0 = scmp.ne.s32.totalorder %s580_s14, 1 }
  0x43   : > { %v221_v2 = vld [vmem:[%s786_s1] sm:$0x3] (!%p358_p0)  ;;  %vm222_vm0 = vcmask (!%p358_p0), 58368  }
  0x44   : > { %220 = sbr.rel (%p358_p0) target bundleno = 75 (0x4b), region = 40  ;;  %223 = vst.msk [vmem:[%s196_s4] sm:$0x3] (!%p358_p0), %vm222_vm0, %v221_v2 }
  0x4b PF: > { %s720_s21 = scalar_lea.sflag [#allocation4], %s194_s29  ;;  %p799_p2 = scmp.ne.s32.totalorder %s792_s25, 0 }
  0x4c   : > { %s360_s6 = sshll.u32 (%p799_p2), %s580_s14, 3 }
  0x4d   : > { %231 = sbr.rel (!%p799_p2) target bundleno = 111 (0x6f), region = 44  ;;  %s233_s7 = ssub.s32 (%p799_p2), 9, %s360_s6 }
  0x4e   : > { %p234_p3 = scmp.lt.s32.totalorder (%p799_p2), %s233_s7, 8 }
  0x54   : > { %s811_s7 = smov (!%p234_p3, %s233_s7), 8 }
  0x55   : > { %s725_s8 = sshll.u32 %s811_s7, 5 }
  0x56   : > { %s238_s12 = ssub.s32 256, %s725_s8 }
  0x57   : > { %239 = vsyncadd %s720_s21, %s238_s12  ;;  %p362_p5 = scmp.ne.s32.totalorder %s725_s8, 0  ;;  %s369_s17 = sshll.u32 %s580_s14, 8 }
  0x58   : > { %s734_s20 = scalar_lea.hbm %s787_s2, %s369_s17  ;;  %s247_s22 = sshll.u32 %s196_s4, 4  ;;  %s248_s22 = int_to_ptr.vmem [resolvable:$true] %s247_s22 }
  0x59   : > { %s485_s23 = scalar_lea.vmem %s248_s22, %s725_s8  ;;  %s591_s27 = smov [#allocation5]  }
  0x5a   : > { %p486_p8 = scmp.ne.s32.totalorder %s248_s22, %s485_s23  ;;  %s489_s30 = sshll.u32 %s591_s27, 4  ;;  %s490_s30 = int_to_ptr.vmem [resolvable:$false] %s489_s30 }
  0x5b   : > { %s491_s29 = scalar_lea.vmem %s490_s30, 512  ;;  %p492_p7 = scmp.lt.s32.totalorder %s248_s22, %s490_s30 }
  0x5c   : > { %p487_p11 = pnand %p486_p8, %p362_p5  ;;  %p493_p9 = scmp.lt.s32.totalorder %s491_s29, %s485_s23 }
  0x5e   : > { %p488_p1 = pneg %p487_p11  ;;  %p494_p10 = por %p493_p9, %p492_p7 }
  0x60   : > { %p495_p13 = pnand %p494_p10, %p488_p1 }
  0x62   : > { %498 = shalt.err (!%p495_p13)
}
  0x63   : > { %s499_s14 = scalar_lea.hbm %s734_s20, %s725_s8  ;;  %s503_s28 = scalar_lea.hbm %s787_s2, 288 }
  0x64   : > { %p500_p4 = scmp.ne.s32.totalorder %s734_s20, %s499_s14  ;;  %p504_p0 = scmp.lt.u32.totalorder %s734_s20, %s787_s2 }
  0x65   : > { %p505_p2 = scmp.lt.u32.totalorder %s503_s28, %s499_s14  ;;  %p507_p8 = scmp.lt.u32.totalorder %s499_s14, %s734_s20 }
  0x66   : > { %p501_p6 = pnand %p500_p4, %p362_p5 }
  0x67   : > { %p506_p3 = por %p505_p2, %p504_p0 }
  0x68   : > { %p502_p12 = pneg %p501_p6 }
  0x69   : > { %p508_p11 = por %p507_p8, %p506_p3 }
  0x6b   : > { %p509_p1 = pnand %p508_p11, %p502_p12 }
  0x6d   : > { %512 = shalt.err (!%p509_p1)
}
  0x6e   : > { %250 = dma.vmem_to_hbm [thread:$0]  (%p362_p5), %s248_s22, %s725_s8, %s734_s20, %s720_s21  }
  0x6f PF: > { %s259_s7 = sand.u32 1, %s560_s9   ;;  %p800_p7 = scmp.ne.s32.totalorder %s793_s26, 0 }
  0x70   : > { %p801_p9 = scmp.ge.s32.totalorder %s588_s16, 2  ;;  %s260_s12 = scalar_lea.sflag [#allocation4], %s259_s7 }
  0x72   : > { %p378_p10 = pnand %p801_p9, %p800_p7 }
  0x74   : > { %554 = dma.done.wait (!%p378_p10), %s260_s12, 256  }
  0x75   : > { %556 = vsyncadd (!%p378_p10), %s260_s12, 4294967040  ;;  %s18_s16 = sadd.s32 1, %s588_s16   ;;  %s802_s9 = smov %s564_s10 }
  0x76   : > { %p15_p13 = scmp.ge.s32.totalorder %s18_s16, 4   ;;  %s803_s10 = smov %s568_s11 }
  0x77   : > { %s804_s11 = smov %s665_s24  ;;  %s805_s12 = smov %s576_s13 }
  0x78   : > { %s775_s13 = smov 0   ;;  %s806_s14 = smov %s584_s15 }
  0x79   : > { %s807_s15 = smov %s809_s19  ;;  %17 = sbr.rel (!%p15_p13) target bundleno = 7 (0x7), region = 84 }
  0x80   :  { %265 = vsyncpa [#allocation3], 1 }
  0x81   :  { %267 = vsyncpa [#allocation3 + $0x1], 1 }
  0x82   :  { %268 = vsyncpa [#allocation4], 1 }
  0x83   :  { %270 = vsyncpa [#allocation4 + $0x1], 1 }

</bundles_post_ra>
